<compile_context>
chip_gen: v7x
topology: tpu7x:2x2x1
jax: 0.10.0
libtpu: 0.0.40
codegen_flags: <defaults>
</compile_context>

<pallas_src>
import functools

import jax
import jax.numpy as jnp
from jax.experimental import pallas as pl
from jax.experimental.pallas import tpu as pltpu


def _cdan_entropy_kernel(sel_ref, sm_ref, side_ref, out_ref, *,
                         nf_valid, tile, compute_dtype, has_tail):
    """One (tile, G*C) slab of folded softmax rows -> one (G, 4G) partial block."""
    # Lane-dense elementwise entropy terms (VPU + EUP).
    p = sm_ref[...].astype(compute_dtype)                        # (tile, G*C)
    q = -p * jnp.log(p + 1e-5)                                   # (tile, G*C)

    # Grouped per-original-row entropy via a 0/1 selector matmul on the MXU.
    ent = jnp.dot(q, sel_ref[...],
                  preferred_element_type=jnp.float32)            # (tile, G)
    w = 1.0 + jnp.exp(-ent)                                      # (tile, G) f32

    if has_tail:
        # Zero folded rows past the real extent BEFORE the contraction so
        # garbage HBM data can never contribute (NaN * 0 == NaN otherwise).
        r = (jax.lax.broadcasted_iota(jnp.int32, w.shape, 0)
             + pl.program_id(0) * tile)
        w = jnp.where(r < nf_valid, w, 0.0)

    # O[g', 4*g + k] = sum_r w[r, g'] * side[r, 4*g + k]   (second MXU matmul,
    # contraction over the row axis of both operands; the g' == g diagonal is
    # extracted in the wrapper).  Side rows beyond the real extent are zeros.
    out_ref[...] = jax.lax.dot_general(
        w, side_ref[...],
        dimension_numbers=(((0,), (0,)), ((), ())),
        preferred_element_type=jnp.float32)                      # (G, 4G)


def cdan_loss(ad_out, softmax_output, coeff=1.0, *, tile_rows=None):
    """CDANLoss(use_entropy=True).forward — returns a scalar f32.

    `coeff` plays the role of the module's `self.coeff` (the forward-time
    `coeff` argument of the PyTorch code only feeds the backward-only hook).
    """
    N = int(ad_out.shape[0])
    C = int(softmax_output.shape[1])
    B = N // 2

    # ---------- O(N) per-row precompute (fused XLA, negligible vs O(N*C)) ----
    x = ad_out.reshape(N).astype(jnp.float32)
    src = (jnp.arange(N) < B).astype(jnp.float32)                # dc_target
    tgt = 1.0 - src
    # BCEWithLogitsLoss(reduction='none'), numerically-stable log1p form.
    loss = jnp.maximum(x, 0.0) - x * src + jnp.log1p(jnp.exp(-jnp.abs(x)))
    side = jnp.stack([src, tgt, src * loss, tgt * loss], axis=1)  # (N, 4) f32

    # ---------- lane folding: pack G original rows per folded row ------------
    max_g = max(1, 128 // C)
    G = 1
    for g in range(min(max_g, N), 0, -1):
        if N % g == 0:
            G = g
            break
    Nf = N // G
    GC = G * C

    sm_f = softmax_output.reshape(Nf, GC)         # row-major fold (no copy)
    side_f = side.reshape(Nf, 4 * G)

    compute_dtype = (jnp.bfloat16 if softmax_output.dtype == jnp.bfloat16
                     else jnp.float32)

    # Selector S[g*C + c, g'] = 1[g == g']  ->  (q @ S)[r, g] = entropy(row r*G+g).
    sel = (jnp.arange(GC, dtype=jnp.int32)[:, None] // C
           == jnp.arange(G, dtype=jnp.int32)[None, :]).astype(compute_dtype)

    # ---------- per-generation tile sizing ------------------------------------
    itemsize = jnp.dtype(sm_f.dtype).itemsize
    try:
        vmem_cap = int(getattr(pltpu.get_tpu_info(), "vmem_capacity_bytes", 0))
    except Exception:
        vmem_cap = 0
    if vmem_cap >= 100 * 1024 * 1024:             # v5e / v6e: 128 MiB VMEM
        target_block_bytes = 8 * 1024 * 1024
        vmem_limit = 64 * 1024 * 1024
    else:                                         # v7x (64 MiB VMEM) or unknown
        target_block_bytes = 4 * 1024 * 1024
        vmem_limit = 48 * 1024 * 1024

    gran = max(8, 32 // itemsize)                 # 8 rows f32, 16 bf16, 32 int8
    tile = max(gran,
               (target_block_bytes // max(1, GC * itemsize)) // gran * gran)
    if tile_rows is not None:
        tile = max(gran, (int(tile_rows) // gran) * gran)
    nf_ceil = ((Nf + gran - 1) // gran) * gran
    tile = min(tile, nf_ceil)

    steps = pl.cdiv(Nf, tile)
    has_tail = (Nf % tile) != 0

    # Zero-pad only the tiny side array so tail blocks read zeros; the big
    # softmax tensor is never padded/copied (tail handled by the in-kernel mask).
    pad_rows = steps * tile - Nf
    if pad_rows:
        side_f = jnp.pad(side_f, ((0, pad_rows), (0, 0)))

    kernel = functools.partial(
        _cdan_entropy_kernel, nf_valid=Nf, tile=tile,
        compute_dtype=compute_dtype, has_tail=has_tail)

    o_part = pl.pallas_call(
        kernel,
        out_shape=jax.ShapeDtypeStruct((steps, G, 4 * G), jnp.float32),
        grid=(steps,),
        in_specs=[
            pl.BlockSpec((GC, G), lambda i: (0, 0)),         # selector (resident)
            pl.BlockSpec((tile, GC), lambda i: (i, 0)),      # folded softmax
            pl.BlockSpec((tile, 4 * G), lambda i: (i, 0)),   # folded side values
        ],
        out_specs=pl.BlockSpec((None, G, 4 * G), lambda i: (i, 0, 0)),
        compiler_params=pltpu.CompilerParams(
            dimension_semantics=("parallel",),               # v7x: use both TCs
            vmem_limit_bytes=vmem_limit,
        ),
    )(sel, sm_f, side_f)

    # ---------- tiny final combine in plain JAX -------------------------------
    o = jnp.sum(o_part, axis=0).reshape(G, G, 4)             # O[g', g, k]
    s = jnp.sum(o * jnp.eye(G, dtype=o.dtype)[:, :, None], axis=(0, 1))  # (4,)
    coeff = jnp.asarray(coeff, dtype=jnp.float32)
    # sum(weight) = sum(sw)/sum(sw) + sum(tw)/sum(tw) = 2 exactly.
    return 0.5 * coeff * (s[2] / s[0] + s[3] / s[1])


def _reference(ad_out, softmax_output, coeff=1.0):
    # Pure-JAX reference mirroring the PyTorch forward (incl. /sum(weight)).
    N = ad_out.shape[0]
    B = N // 2
    x = ad_out.reshape(-1).astype(jnp.float32)
    y = jnp.concatenate([jnp.ones((B,)), jnp.zeros((N - B,))]).astype(jnp.float32)
    loss = jnp.maximum(x, 0.0) - x * y + jnp.log1p(jnp.exp(-jnp.abs(x)))
    p = softmax_output.astype(jnp.float32)
    ent = jnp.sum(-p * jnp.log(p + 1e-5), axis=1)
    ent = 1.0 + jnp.exp(-ent)
    sw = ent * y
    tw = ent * (1.0 - y)
    w = sw / jnp.sum(sw) + tw / jnp.sum(tw)
    return coeff * jnp.sum(w * loss) / jnp.sum(w)


if __name__ == "__main__":
    key = jax.random.PRNGKey(0)
    k1, k2, k3, k4, k5, k6 = jax.random.split(key, 6)

    # case 1: batch=4 source + 4 target rows, 8 classes (single folded block).
    batch, C1 = 4, 8
    N1 = 2 * batch
    ad1 = jax.random.normal(k1, (N1, 1), dtype=jnp.float32)
    sm1 = jax.nn.softmax(jax.random.normal(k2, (N1, C1), dtype=jnp.float32), -1)
    out1 = jax.block_until_ready(cdan_loss(ad1, sm1, coeff=1.0))
    ref1 = _reference(ad1, sm1, coeff=1.0)
    assert jnp.allclose(out1, ref1, rtol=1e-5, atol=1e-5), (out1, ref1)

    # case 2: ragged fold (N=20 -> G=5) + padded tail block.
    N2, C2 = 20, 16
    ad2 = jax.random.normal(k3, (N2, 1), dtype=jnp.float32)
    sm2 = jax.nn.softmax(jax.random.normal(k4, (N2, C2), dtype=jnp.float32), -1)
    out2 = jax.block_until_ready(cdan_loss(ad2, sm2, coeff=0.25))
    ref2 = _reference(ad2, sm2, coeff=0.25)
    assert jnp.allclose(out2, ref2, rtol=1e-5, atol=1e-5), (out2, ref2)

    # case 3: multi-step "parallel" grid + in-kernel tail masking (N=1200, C=8).
    N3, C3 = 1200, 8
    ad3 = jax.random.normal(k5, (N3, 1), dtype=jnp.float32)
    sm3 = jax.nn.softmax(jax.random.normal(k6, (N3, C3), dtype=jnp.float32), -1)
    out3 = jax.block_until_ready(cdan_loss(ad3, sm3, coeff=1.0, tile_rows=32))
    ref3 = _reference(ad3, sm3, coeff=1.0)
    assert jnp.allclose(out3, ref3, rtol=1e-5, atol=1e-5), (out3, ref3)

    # case 4: bf16 storage + bf16 VPU/EUP math (f32 accumulation) — looser tol.
    sm3_bf16 = sm3.astype(jnp.bfloat16)
    out4 = jax.block_until_ready(cdan_loss(ad3, sm3_bf16, coeff=1.0))
    ref4 = _reference(ad3, sm3_bf16, coeff=1.0)
    assert jnp.allclose(out4, ref4, rtol=5e-2, atol=5e-2), (out4, ref4)

    print("KERNEL_OK")
</pallas_src>

<mosaic_0001>
module attributes {stable_mosaic.version = 11 : i64} {
  func.func @_cdan_entropy_kernel(%arg0: i32, %arg1: memref<64x8xf32, #tpu.memory_space<vmem>>, %arg2: memref<8x64xf32, #tpu.memory_space<vmem>>, %arg3: memref<8x32xf32, #tpu.memory_space<vmem>>, %arg4: memref<1x8x32xf32, #tpu.memory_space<vmem>>) attributes {dimension_semantics = [#tpu.dimension_semantics<parallel>], iteration_bounds = array<i64: 1>, scalar_prefetch = 0 : i64, scratch_operands = 0 : i64, tpu.core_type = #tpu.core_type<tc>, window_params = [{pipeline_mode = #tpu.pipeline_mode<synchronous>, transform_indices = @transform_0, window_bounds = array<i64: 64, 8>}, {transform_indices = @transform_1, window_bounds = array<i64: 8, 64>}, {transform_indices = @transform_2, window_bounds = array<i64: 8, 32>}, {transform_indices = @transform_3, window_bounds = array<i64: 1, 8, 32>}]} {
    %c0 = arith.constant 0 : index
    %c0_0 = arith.constant 0 : index
    %0 = vector.load %arg2[%c0, %c0_0] : memref<8x64xf32, #tpu.memory_space<vmem>>, vector<8x64xf32>
    %cst = arith.constant 0.000000e+00 : f32
    %1 = vector.broadcast %cst : f32 to vector<8x64xf32>
    %2 = arith.subf %1, %0 : vector<8x64xf32>
    %cst_1 = arith.constant 9.99999974E-6 : f32
    %3 = vector.broadcast %cst_1 : f32 to vector<8x64xf32>
    %4 = arith.addf %0, %3 : vector<8x64xf32>
    %5 = math.log %4 : vector<8x64xf32>
    %6 = arith.mulf %2, %5 : vector<8x64xf32>
    %c0_2 = arith.constant 0 : index
    %c0_3 = arith.constant 0 : index
    %7 = vector.load %arg1[%c0_2, %c0_3] : memref<64x8xf32, #tpu.memory_space<vmem>>, vector<64x8xf32>
    %cst_4 = arith.constant dense<0.000000e+00> : vector<8x8xf32>
    %8 = tpu.matmul %6, %7, %cst_4 {dimension_numbers = #tpu.dot_dimension_numbers<[1], [0], [0], [1], [0, 0, 1, 1], [], []>} : vector<8x64xf32>, vector<64x8xf32>, vector<8x8xf32> -> vector<8x8xf32>
    %cst_5 = arith.constant 0.000000e+00 : f32
    %9 = vector.broadcast %cst_5 : f32 to vector<8x8xf32>
    %10 = arith.subf %9, %8 : vector<8x8xf32>
    %11 = math.exp %10 : vector<8x8xf32>
    %cst_6 = arith.constant 1.000000e+00 : f32
    %12 = vector.broadcast %cst_6 : f32 to vector<8x8xf32>
    %13 = arith.addf %12, %11 : vector<8x8xf32>
    %14 = tpu.iota {dimensions = array<i32: 0>} : vector<8x8xi32>
    %c8_i32 = arith.constant 8 : i32
    %15 = arith.muli %arg0, %c8_i32 : i32
    %16 = vector.broadcast %15 : i32 to vector<8x8xi32>
    %17 = arith.addi %14, %16 : vector<8x8xi32>
    %c1_i32 = arith.constant 1 : i32
    %18 = vector.broadcast %c1_i32 : i32 to vector<8x8xi32>
    %19 = arith.cmpi slt, %17, %18 : vector<8x8xi32>
    %cst_7 = arith.constant 0.000000e+00 : f32
    %20 = vector.broadcast %cst_7 : f32 to vector<8x8xf32>
    %21 = arith.select %19, %13, %20 : vector<8x8xi1>, vector<8x8xf32>
    %c0_8 = arith.constant 0 : index
    %c0_9 = arith.constant 0 : index
    %22 = vector.load %arg3[%c0_8, %c0_9] : memref<8x32xf32, #tpu.memory_space<vmem>>, vector<8x32xf32>
    %cst_10 = arith.constant dense<0.000000e+00> : vector<8x32xf32>
    %23 = tpu.matmul %21, %22, %cst_10 {dimension_numbers = #tpu.dot_dimension_numbers<[0], [0], [1], [1], [0, 1, 1, 1], [], []>} : vector<8x8xf32>, vector<8x32xf32>, vector<8x32xf32> -> vector<8x32xf32>
    %c0_11 = arith.constant 0 : index
    %c0_12 = arith.constant 0 : index
    %c0_13 = arith.constant 0 : index
    %24 = vector.load %arg4[%c0_11, %c0_12, %c0_13] : memref<1x8x32xf32, #tpu.memory_space<vmem>>, vector<1x8x32xf32>
    %25 = vector.shape_cast %24 : vector<1x8x32xf32> to vector<8x32xf32>
    %26 = vector.shape_cast %23 : vector<8x32xf32> to vector<1x8x32xf32>
    tpu.vector_store %arg4[%c0_11, %c0_12, %c0_13], %26 {strides = array<i32>} : memref<1x8x32xf32, #tpu.memory_space<vmem>>, vector<1x8x32xf32>,
    return
  }
  func.func @transform_0(%arg0: i32) -> (i32, i32) {
    %c0_i32 = arith.constant 0 : i32
    %c0_i32_0 = arith.constant 0 : i32
    %c0_i32_1 = arith.constant 0 : i32
    return %c0_i32, %c0_i32_0 : i32, i32
  }
  func.func @transform_1(%arg0: i32) -> (i32, i32) {
    %c0_i32 = arith.constant 0 : i32
    %c0_i32_0 = arith.constant 0 : i32
    return %arg0, %c0_i32 : i32, i32
  }
  func.func @transform_2(%arg0: i32) -> (i32, i32) {
    %c0_i32 = arith.constant 0 : i32
    %c0_i32_0 = arith.constant 0 : i32
    return %arg0, %c0_i32 : i32, i32
  }
  func.func @transform_3(%arg0: i32) -> (i32, i32, i32) {
    %c0_i32 = arith.constant 0 : i32
    %c0_i32_0 = arith.constant 0 : i32
    %c0_i32_1 = arith.constant 0 : i32
    return %arg0, %c0_i32, %c0_i32_0 : i32, i32, i32
  }
}

</mosaic_0001>

<bundles_post_ra>
// kernel: tpu_custom_call.1
= control target key start
LH: loop header
LB: loop body
LE: loop exit
PB: predicated region body
PF: predicated region fallthrough
CT: control target
= control target key end

     0   :  { %v318_v3 = vmov 0.0|0.0   ;;  %vm319_vm0 = vmmov 0   ;;  %v320_v6 = vmov 0.0   ;;  %s384_s0 = inlined_call_operand.vmem [shape: f32[64,8], index: 0, kind: input, shape index: {}]   ;;  %s385_s1 = inlined_call_operand.vmem [shape: f32[1,64], index: 1, kind: input, shape index: {}]   ;;  %s386_s2 = inlined_call_operand.vmem [shape: f32[8,32], index: 2, kind: input, shape index: {}]   ;;  %s387_s3 = inlined_call_operand.hbm [shape: f32[1,8,32], index: 3, kind: output, shape index: {}]  }
   0x1   :  { %v21_v0 = vld [vmem:[%s384_s0] sm:$0xff]  ;;  %v22_v1 = vld [vmem:[%s384_s0 + $0x8] sm:$0xff]  ;;  %v23_v2 = vld [vmem:[%s384_s0 + $0x10] sm:$0xff]  ;;  %274 = vmatprep.subr.bf16.mxu0 %v318_v3  ;;  %266 = vmatprep.mubr.msk.f32.mxu0 %vm319_vm0, %v320_v6 }
   0x2   :  { %v275_v4 = vpack.c.bf16 %v22_v1, %v21_v0  ;;  %v24_v5 = vld [vmem:[%s384_s0 + $0x18] sm:$0xff]  ;;  %v15_v7 = vld [vmem:[%s385_s1] sm:$0xff]  ;;  %269 = vmatprep.subr.mxu1 %v320_v6  ;;  %271 = vmatprep.mubr.msk.f32.mxu1 %vm319_vm0, %v320_v6 }
   0x3   :  { %v278_v8 = vpack.c.bf16 %v24_v5, %v23_v2  ;;  %v17_v9 = vadd.f32 1e-05, %v15_v7 }
   0x4   :  { %276 = vmatpush3.bf16.msra.mxu0 %v275_v4 }
   0x5   :  { %8 = vsyncpa [#allocation3], 0  ;;  %277 = vmatprep.subr.bf16.mxu0 %v318_v3  ;;  %v25_v10 = vld [vmem:[%s384_s0 + $0x20] sm:$0xff]  ;;  %v26_v11 = vld [vmem:[%s384_s0 + $0x28] sm:$0xff]  ;;  %290 = vlog2.f32 %v17_v9  ;;  %v16_v16 = vsub.f32 0.0, %v15_v7  ;;  %vm29_vm1 = vcmask 523264   ;;  %v107_v25 = vlaneseq }
   0x6   :  { %v281_v12 = vpack.c.bf16 %v26_v11, %v25_v10  ;;  %v27_v13 = vld [vmem:[%s384_s0 + $0x30] sm:$0xff]  ;;  %v28_v14 = vld [vmem:[%s384_s0 + $0x38] sm:$0xff]  ;;  %v114_v20 = vld [vmem:[%s386_s2] sm:$0xff]  ;;  %vm147_vm3 = vcmask 64512   ;;  %s321_s0 = smov [#allocation2]   ;;  %vm221_vm4 = vcmask 261120  }
   0x7   :  { %v284_v15 = vpack.c.bf16 %v28_v14, %v27_v13  ;;  %270 = vmatpush3.msra.mxu1 %v114_v20  ;;  %v108_v26 = vshrl.u32 %v107_v25, 7  ;;  %s229_s4 = sshll.u32 %s321_s0, 4  ;;  %s230_s4 = int_to_ptr.vmem [resolvable:$true] %s229_s4 }
   0x8   :  { %279 = vmatpush3.bf16.msra.mxu0 %v278_v8  ;;  %s294_s2 = scalar_lea.vmem %s230_s4, 128  ;;  %p299_p1 = scmp.lt.s32.totalorder %s230_s4, %s230_s4 }
   0x9   :  { %280 = vmatprep.subr.bf16.mxu0 %v318_v3  ;;  %vm112_vm2 = vcmp.lt.s32.totalorder %v108_v26, 1  ;;  %p295_p0 = scmp.ne.s32.totalorder %s230_s4, %s294_s2  ;;  %p300_p2 = scmp.lt.s32.totalorder %s294_s2, %s294_s2 }
   0xb   :  { %p301_p3 = por %p300_p2, %p299_p1 }
   0xc   :  { %282 = vmatpush3.bf16.msra.mxu0 %v281_v12 }
   0xd   :  { %283 = vmatprep.subr.bf16.mxu0 %v318_v3  ;;  %p302_p4 = pnand %p301_p3, %p295_p0 }
   0xf   :  { %v291_v17 = vpop.eup %290 }
  0x10   :  { %285 = vmatpush3.bf16.msra.mxu0 %v284_v15  ;;  %v19_v18 = vmul.f32 0.6931472, %v291_v17 }
  0x12   :  { %v20_v19 = vmul.f32 %v19_v18, %v16_v16 }
  0x14   :  { %267 = vmatmul.mubr.msk.f32.vlgmr.msra.gmra.mrb[0].mxu0 %vm29_vm1, %v20_v19 }
  0xe7   :  { %v99_v21 = vpop.f32.mrb[0].mxu0 }
  0xe8   :  { %v103_v22 = vsub.f32 0.0, %v99_v21  ;;  %v268_v23 = vpop.f32.mrb[1].mxu0 }
  0xea   :  { %v104_v24 = vmul.f32 1.442695, %v103_v22 }
  0xec   :  { %292 = vpow2.f32 %v104_v24 }
  0xf6   :  { %v293_v27 = vpop.eup %292 }
  0xf7   :  { %v106_v28 = vadd.f32 1.0, %v293_v27 }
  0xf9   :  { %v113_v29 = vsel %vm112_vm2, %v106_v28, 0.0 }
  0xfa   :  { %115 = vxpose.xlu0.b32.start.end [1/1] (short) (narrow) %v113_v29, 8 }
 0x17a   :  { %v131_v30 = vpop.trf.xlu0 }
 0x17b   :  { %272 = vmatmul.mubr.msk.f32.vlgmr.msra.gmra.mrb[0].mxu1 %vm147_vm3, %v131_v30 }
 0x24e   :  { %v217_v31 = vpop.f32.mrb[0].mxu1 }
 0x24f   :  { %222 = vst.msk [vmem:[#allocation2] sm:$0xff] %vm221_vm4, %v217_v31  ;;  %v273_v32 = vpop.f32.mrb[1].mxu1 }
 0x250   :  { %305 = shalt.err (!%p302_p4)
}
 0x251   :  { %s306_s7 = scalar_lea.hbm %s387_s3, 128 }
 0x252   :  { %p307_p5 = scmp.ne.s32.totalorder %s387_s3, %s306_s7  ;;  %p310_p6 = scmp.lt.u32.totalorder %s306_s7, %s387_s3 }
 0x254   :  { %p312_p7 = pnand %p310_p6, %p307_p5 }
 0x256   :  { %315 = shalt.err (!%p312_p7)
}
 0x257   :  { %232 = dma.vmem_to_hbm [thread:$0]  %s230_s4, 128, %s387_s3, [#allocation3]  }
 0x258   :  { %316 = dma.done.wait [#allocation3], 128  }
 0x259   :  { %317 = vsyncadd [#allocation3], 4294967168 }
 0x25a   :  { %236 = vsyncpa [#allocation3], 1 }

</bundles_post_ra>
